<compile_context>
chip_gen: v5e
topology: v5e:2x2
jax: 0.10.0
libtpu: 0.0.40
codegen_flags: <defaults>
</compile_context>

<pallas_src>
import functools

import jax
import jax.numpy as jnp
from jax.experimental import pallas as pl
from jax.experimental.pallas import tpu as pltpu


def _random_shift_kernel(shift_ref, x_ref, o_ref, *, pad):
    # shift_ref: SMEM int32 (2*n,), flattened [sx0, sy0, sx1, sy1, ...]
    # x_ref:     VMEM in block  (batch_tile, c, h, w)
    # o_ref:     VMEM out block (batch_tile, c, h, w)
    tb, c, h, w = o_ref.shape
    step = pl.program_id(0)

    for j in range(tb):  # unrolled at trace time
        b = step * tb + j
        sx = shift_ref[2 * b]          # column (x) shift in [0, 2*pad]
        sy = shift_ref[2 * b + 1]      # row    (y) shift in [0, 2*pad]

        img = x_ref[j].astype(jnp.float32)                    # (c, h, w)

        # Row selector: R[i, r] = (r == clamp(i + sy - pad, 0, h-1)).
        out_r = jax.lax.broadcasted_iota(jnp.int32, (h, h), 0)
        src_r = jax.lax.broadcasted_iota(jnp.int32, (h, h), 1)
        rsel = (src_r == jnp.clip(out_r + sy - pad, 0, h - 1)).astype(jnp.float32)

        # Column selector: C[j, s] = (s == clamp(j + sx - pad, 0, w-1)).
        out_c = jax.lax.broadcasted_iota(jnp.int32, (w, w), 0)
        src_c = jax.lax.broadcasted_iota(jnp.int32, (w, w), 1)
        csel = (src_c == jnp.clip(out_c + sx - pad, 0, w - 1)).astype(jnp.float32)

        # out[c, i, j] = sum_{r,s} R[i, r] * img[c, r, s] * C[j, s]
        rows = jnp.einsum("ir,crs->cis", rsel, img,
                          preferred_element_type=jnp.float32)
        out = jnp.einsum("cis,js->cij", rows, csel,
                         preferred_element_type=jnp.float32)
        o_ref[j] = out.astype(o_ref.dtype)


def _pick_batch_tile(n, c, h, w, itemsize, max_tile=8,
                     vmem_budget_bytes=8 << 20):
    """Largest divisor of n (<= max_tile) whose live VMEM set fits the budget."""
    best = 1
    per_elem = c * h * w * itemsize
    for tb in range(1, min(n, max_tile) + 1):
        if n % tb:
            continue
        # double-buffered in block + double-buffered out block + f32 temporaries
        live = 4 * tb * per_elem + 2 * c * h * w * 4
        if live <= vmem_budget_bytes:
            best = tb
    return best


def random_shifts_aug(x, shifts, pad):
    """x: (n, c, h, w) float array; shifts: (n, 2) int32 in [0, 2*pad].

    shifts[:, 0] is the x (column) shift, shifts[:, 1] the y (row) shift,
    matching torch.randint(0, 2*pad+1, (n, 1, 1, 2)) in RandomShiftsAug.
    """
    n, c, h, w = x.shape
    assert h == w
    itemsize = jnp.dtype(x.dtype).itemsize

    # Flat 1-D int32 shifts -> compact SMEM footprint.
    shifts_flat = shifts.astype(jnp.int32).reshape(-1)        # (2*n,)

    batch_tile = _pick_batch_tile(n, c, h, w, itemsize)

    grid_spec = pltpu.PrefetchScalarGridSpec(
        num_scalar_prefetch=1,                                # shifts -> SMEM
        grid=(n // batch_tile,),
        in_specs=[pl.BlockSpec((batch_tile, c, h, w),
                               lambda i, shifts_ref: (i, 0, 0, 0))],
        out_specs=pl.BlockSpec((batch_tile, c, h, w),
                               lambda i, shifts_ref: (i, 0, 0, 0)),
    )

    bytes_accessed = 2 * n * c * h * w * itemsize             # read + write once
    flops = 2 * n * c * h * w * (h + w)                       # one-hot selector matmuls

    return pl.pallas_call(
        functools.partial(_random_shift_kernel, pad=pad),
        out_shape=jax.ShapeDtypeStruct((n, c, h, w), x.dtype),
        grid_spec=grid_spec,
        compiler_params=pltpu.CompilerParams(
            dimension_semantics=("parallel",)),               # megacore on v7x
        cost_estimate=pl.CostEstimate(
            flops=flops, transcendentals=0, bytes_accessed=bytes_accessed),
    )(shifts_flat, x)


def _reference(x, shifts, pad):
    """Pure-JAX reference: replicate pad + per-image crop."""
    n, c, h, w = x.shape
    xp = jnp.pad(x, ((0, 0), (0, 0), (pad, pad), (pad, pad)), mode="edge")
    outs = []
    for b in range(n):
        sx = int(shifts[b, 0])
        sy = int(shifts[b, 1])
        outs.append(jax.lax.dynamic_slice(xp[b], (0, sy, sx), (c, h, w)))
    return jnp.stack(outs, axis=0)


if __name__ == "__main__":
    pad = 4
    n, c, h, w = 2, 4, 16, 16

    key = jax.random.PRNGKey(0)
    kx, ks = jax.random.split(key)
    x = jax.random.normal(kx, (n, c, h, w), dtype=jnp.float32)
    # torch.randint(0, 2*pad+1, (n,1,1,2)) -> integer shifts per image.
    # TODO(synk): the torch module draws these with torch RNG; here they are
    # generated host-side and passed in explicitly.
    shifts = jax.random.randint(ks, (n, 2), 0, 2 * pad + 1, dtype=jnp.int32)

    out = random_shifts_aug(x, shifts, pad)
    out = jax.block_until_ready(out)

    ref = _reference(x, shifts, pad)
    assert out.shape == (n, c, h, w)
    assert jnp.allclose(out, ref, atol=1e-5, rtol=1e-5), "mismatch vs reference"

    print("KERNEL_OK")
</pallas_src>

<mosaic_0001>
module attributes {stable_mosaic.version = 11 : i64} {
  func.func @_random_shift_kernel(%arg0: i32, %arg1: memref<4xi32, #tpu.memory_space<smem>>, %arg2: memref<2x4x16x16xf32, #tpu.memory_space<vmem>>, %arg3: memref<2x4x16x16xf32, #tpu.memory_space<vmem>>) attributes {dimension_semantics = [#tpu.dimension_semantics<parallel>], iteration_bounds = array<i64: 1>, scalar_prefetch = 1 : i64, scratch_operands = 0 : i64, tpu.core_type = #tpu.core_type<tc>, window_params = [{transform_indices = @transform_0, window_bounds = array<i64: 2, 4, 16, 16>}, {transform_indices = @transform_1, window_bounds = array<i64: 2, 4, 16, 16>}]} {
    %c2_i32 = arith.constant 2 : i32
    %0 = arith.muli %arg0, %c2_i32 : i32
    %c0_i32 = arith.constant 0 : i32
    %1 = arith.addi %0, %c0_i32 : i32
    %c2_i32_0 = arith.constant 2 : i32
    %2 = arith.muli %c2_i32_0, %1 : i32
    %3 = arith.index_cast %2 : i32 to index
    %4 = memref.load %arg1[%3] : memref<4xi32, #tpu.memory_space<smem>>
    %c2_i32_1 = arith.constant 2 : i32
    %5 = arith.muli %c2_i32_1, %1 : i32
    %c1_i32 = arith.constant 1 : i32
    %6 = arith.addi %5, %c1_i32 : i32
    %7 = arith.index_cast %6 : i32 to index
    %8 = memref.load %arg1[%7] : memref<4xi32, #tpu.memory_space<smem>>
    %c0 = arith.constant 0 : index
    %c0_2 = arith.constant 0 : index
    %c0_3 = arith.constant 0 : index
    %c0_4 = arith.constant 0 : index
    %9 = vector.load %arg2[%c0, %c0_2, %c0_3, %c0_4] : memref<2x4x16x16xf32, #tpu.memory_space<vmem>>, vector<1x4x16x16xf32>
    %10 = vector.shape_cast %9 : vector<1x4x16x16xf32> to vector<4x16x16xf32>
    %11 = tpu.iota {dimensions = array<i32: 0>} : vector<16x16xi32>
    %12 = tpu.iota {dimensions = array<i32: 1>} : vector<16x16xi32>
    %13 = vector.broadcast %8 : i32 to vector<16x16xi32>
    %14 = arith.addi %11, %13 : vector<16x16xi32>
    %c4_i32 = arith.constant 4 : i32
    %15 = vector.broadcast %c4_i32 : i32 to vector<16x16xi32>
    %16 = arith.subi %14, %15 : vector<16x16xi32>
    %c0_i32_5 = arith.constant 0 : i32
    %c15_i32 = arith.constant 15 : i32
    %17 = vector.broadcast %c0_i32_5 : i32 to vector<16x16xi32>
    %18 = arith.maxsi %17, %16 : vector<16x16xi32>
    %19 = vector.broadcast %c15_i32 : i32 to vector<16x16xi32>
    %20 = arith.minsi %19, %18 : vector<16x16xi32>
    %21 = arith.cmpi eq, %12, %20 : vector<16x16xi32>
    %22 = arith.extui %21 : vector<16x16xi1> to vector<16x16xi32>
    %23 = arith.sitofp %22 : vector<16x16xi32> to vector<16x16xf32>
    %24 = tpu.iota {dimensions = array<i32: 0>} : vector<16x16xi32>
    %25 = tpu.iota {dimensions = array<i32: 1>} : vector<16x16xi32>
    %26 = vector.broadcast %4 : i32 to vector<16x16xi32>
    %27 = arith.addi %24, %26 : vector<16x16xi32>
    %c4_i32_6 = arith.constant 4 : i32
    %28 = vector.broadcast %c4_i32_6 : i32 to vector<16x16xi32>
    %29 = arith.subi %27, %28 : vector<16x16xi32>
    %c0_i32_7 = arith.constant 0 : i32
    %c15_i32_8 = arith.constant 15 : i32
    %30 = vector.broadcast %c0_i32_7 : i32 to vector<16x16xi32>
    %31 = arith.maxsi %30, %29 : vector<16x16xi32>
    %32 = vector.broadcast %c15_i32_8 : i32 to vector<16x16xi32>
    %33 = arith.minsi %32, %31 : vector<16x16xi32>
    %34 = arith.cmpi eq, %25, %33 : vector<16x16xi32>
    %35 = arith.extui %34 : vector<16x16xi1> to vector<16x16xi32>
    %36 = arith.sitofp %35 : vector<16x16xi32> to vector<16x16xf32>
    "tpu.trace_start"() <{level = 10 : i32, message = "ir,crs->cis"}> : () -> ()
    %cst = arith.constant dense<0.000000e+00> : vector<4x16x16xf32>
    %37 = tpu.matmul %10, %23, %cst {dimension_numbers = #tpu.dot_dimension_numbers<[1], [1], [0, 2], [0], [0, 0, 0, 2, 1, 0], [], []>} : vector<4x16x16xf32>, vector<16x16xf32>, vector<4x16x16xf32> -> vector<4x16x16xf32>
    %38 = tpu.transpose %37, [0, 2, 1] : vector<4x16x16xf32> -> vector<4x16x16xf32>
    "tpu.trace_stop"() : () -> ()
    "tpu.trace_start"() <{level = 10 : i32, message = "cis,js->cij"}> : () -> ()
    %cst_9 = arith.constant dense<0.000000e+00> : vector<4x16x16xf32>
    %39 = tpu.matmul %38, %36, %cst_9 {dimension_numbers = #tpu.dot_dimension_numbers<[2], [1], [0, 1], [0], [0, 0, 0, 1, 1, 0], [], []>} : vector<4x16x16xf32>, vector<16x16xf32>, vector<4x16x16xf32> -> vector<4x16x16xf32>
    "tpu.trace_stop"() : () -> ()
    %c0_10 = arith.constant 0 : index
    %c0_11 = arith.constant 0 : index
    %c0_12 = arith.constant 0 : index
    %c0_13 = arith.constant 0 : index
    %40 = vector.load %arg3[%c0_10, %c0_11, %c0_12, %c0_13] : memref<2x4x16x16xf32, #tpu.memory_space<vmem>>, vector<1x4x16x16xf32>
    %41 = vector.shape_cast %40 : vector<1x4x16x16xf32> to vector<4x16x16xf32>
    %42 = vector.shape_cast %39 : vector<4x16x16xf32> to vector<1x4x16x16xf32>
    tpu.vector_store %arg3[%c0_10, %c0_11, %c0_12, %c0_13], %42 {strides = array<i32>} : memref<2x4x16x16xf32, #tpu.memory_space<vmem>>, vector<1x4x16x16xf32>,
    %c2_i32_14 = arith.constant 2 : i32
    %43 = arith.muli %arg0, %c2_i32_14 : i32
    %c1_i32_15 = arith.constant 1 : i32
    %44 = arith.addi %43, %c1_i32_15 : i32
    %c2_i32_16 = arith.constant 2 : i32
    %45 = arith.muli %c2_i32_16, %44 : i32
    %46 = arith.index_cast %45 : i32 to index
    %47 = memref.load %arg1[%46] : memref<4xi32, #tpu.memory_space<smem>>
    %c2_i32_17 = arith.constant 2 : i32
    %48 = arith.muli %c2_i32_17, %44 : i32
    %c1_i32_18 = arith.constant 1 : i32
    %49 = arith.addi %48, %c1_i32_18 : i32
    %50 = arith.index_cast %49 : i32 to index
    %51 = memref.load %arg1[%50] : memref<4xi32, #tpu.memory_space<smem>>
    %c1 = arith.constant 1 : index
    %c0_19 = arith.constant 0 : index
    %c0_20 = arith.constant 0 : index
    %c0_21 = arith.constant 0 : index
    %52 = vector.load %arg2[%c1, %c0_19, %c0_20, %c0_21] : memref<2x4x16x16xf32, #tpu.memory_space<vmem>>, vector<1x4x16x16xf32>
    %53 = vector.shape_cast %52 : vector<1x4x16x16xf32> to vector<4x16x16xf32>
    %54 = tpu.iota {dimensions = array<i32: 0>} : vector<16x16xi32>
    %55 = tpu.iota {dimensions = array<i32: 1>} : vector<16x16xi32>
    %56 = vector.broadcast %51 : i32 to vector<16x16xi32>
    %57 = arith.addi %54, %56 : vector<16x16xi32>
    %c4_i32_22 = arith.constant 4 : i32
    %58 = vector.broadcast %c4_i32_22 : i32 to vector<16x16xi32>
    %59 = arith.subi %57, %58 : vector<16x16xi32>
    %c0_i32_23 = arith.constant 0 : i32
    %c15_i32_24 = arith.constant 15 : i32
    %60 = vector.broadcast %c0_i32_23 : i32 to vector<16x16xi32>
    %61 = arith.maxsi %60, %59 : vector<16x16xi32>
    %62 = vector.broadcast %c15_i32_24 : i32 to vector<16x16xi32>
    %63 = arith.minsi %62, %61 : vector<16x16xi32>
    %64 = arith.cmpi eq, %55, %63 : vector<16x16xi32>
    %65 = arith.extui %64 : vector<16x16xi1> to vector<16x16xi32>
    %66 = arith.sitofp %65 : vector<16x16xi32> to vector<16x16xf32>
    %67 = tpu.iota {dimensions = array<i32: 0>} : vector<16x16xi32>
    %68 = tpu.iota {dimensions = array<i32: 1>} : vector<16x16xi32>
    %69 = vector.broadcast %47 : i32 to vector<16x16xi32>
    %70 = arith.addi %67, %69 : vector<16x16xi32>
    %c4_i32_25 = arith.constant 4 : i32
    %71 = vector.broadcast %c4_i32_25 : i32 to vector<16x16xi32>
    %72 = arith.subi %70, %71 : vector<16x16xi32>
    %c0_i32_26 = arith.constant 0 : i32
    %c15_i32_27 = arith.constant 15 : i32
    %73 = vector.broadcast %c0_i32_26 : i32 to vector<16x16xi32>
    %74 = arith.maxsi %73, %72 : vector<16x16xi32>
    %75 = vector.broadcast %c15_i32_27 : i32 to vector<16x16xi32>
    %76 = arith.minsi %75, %74 : vector<16x16xi32>
    %77 = arith.cmpi eq, %68, %76 : vector<16x16xi32>
    %78 = arith.extui %77 : vector<16x16xi1> to vector<16x16xi32>
    %79 = arith.sitofp %78 : vector<16x16xi32> to vector<16x16xf32>
    "tpu.trace_start"() <{level = 10 : i32, message = "ir,crs->cis"}> : () -> ()
    %cst_28 = arith.constant dense<0.000000e+00> : vector<4x16x16xf32>
    %80 = tpu.matmul %53, %66, %cst_28 {dimension_numbers = #tpu.dot_dimension_numbers<[1], [1], [0, 2], [0], [0, 0, 0, 2, 1, 0], [], []>} : vector<4x16x16xf32>, vector<16x16xf32>, vector<4x16x16xf32> -> vector<4x16x16xf32>
    %81 = tpu.transpose %80, [0, 2, 1] : vector<4x16x16xf32> -> vector<4x16x16xf32>
    "tpu.trace_stop"() : () -> ()
    "tpu.trace_start"() <{level = 10 : i32, message = "cis,js->cij"}> : () -> ()
    %cst_29 = arith.constant dense<0.000000e+00> : vector<4x16x16xf32>
    %82 = tpu.matmul %81, %79, %cst_29 {dimension_numbers = #tpu.dot_dimension_numbers<[2], [1], [0, 1], [0], [0, 0, 0, 1, 1, 0], [], []>} : vector<4x16x16xf32>, vector<16x16xf32>, vector<4x16x16xf32> -> vector<4x16x16xf32>
    "tpu.trace_stop"() : () -> ()
    %c1_30 = arith.constant 1 : index
    %c0_31 = arith.constant 0 : index
    %c0_32 = arith.constant 0 : index
    %c0_33 = arith.constant 0 : index
    %83 = vector.load %arg3[%c1_30, %c0_31, %c0_32, %c0_33] : memref<2x4x16x16xf32, #tpu.memory_space<vmem>>, vector<1x4x16x16xf32>
    %84 = vector.shape_cast %83 : vector<1x4x16x16xf32> to vector<4x16x16xf32>
    %85 = vector.shape_cast %82 : vector<4x16x16xf32> to vector<1x4x16x16xf32>
    tpu.vector_store %arg3[%c1_30, %c0_31, %c0_32, %c0_33], %85 {strides = array<i32>} : memref<2x4x16x16xf32, #tpu.memory_space<vmem>>, vector<1x4x16x16xf32>,
    return
  }
  func.func @transform_0(%arg0: i32, %arg1: memref<4xi32, #tpu.memory_space<smem>>) -> (i32, i32, i32, i32) {
    %c0_i32 = arith.constant 0 : i32
    %c0_i32_0 = arith.constant 0 : i32
    %c0_i32_1 = arith.constant 0 : i32
    %c0_i32_2 = arith.constant 0 : i32
    return %arg0, %c0_i32, %c0_i32_0, %c0_i32_1 : i32, i32, i32, i32
  }
  func.func @transform_1(%arg0: i32, %arg1: memref<4xi32, #tpu.memory_space<smem>>) -> (i32, i32, i32, i32) {
    %c0_i32 = arith.constant 0 : i32
    %c0_i32_0 = arith.constant 0 : i32
    %c0_i32_1 = arith.constant 0 : i32
    %c0_i32_2 = arith.constant 0 : i32
    return %arg0, %c0_i32, %c0_i32_0, %c0_i32_1 : i32, i32, i32, i32
  }
}

</mosaic_0001>

<bundles_post_ra>
// kernel: tpu_custom_call.1
= control target key start
LH: loop header
LB: loop body
LE: loop exit
PB: predicated region body
PF: predicated region fallthrough
CT: control target
= control target key end

     0   :  { %s1106_s12 = smov [#allocation3]   ;;  %s1229_s0 = inlined_call_operand.hbm [shape: s32[4], index: 0, kind: input, shape index: {}]   ;;  %s1230_s1 = inlined_call_operand.hbm [shape: f32[2,4,16,16], index: 1, kind: input, shape index: {}]   ;;  %s1231_s2 = inlined_call_operand.hbm [shape: f32[2,4,16,16], index: 2, kind: output, shape index: {}]  }
   0x1   :  { %s8_s11 = sshll.u32 %s1229_s0, 4  ;;  %s9_s11 = int_to_ptr.hbm [resolvable:$true] %s8_s11 }
   0x2   :  { %11 = dma.hbm_to_smem %s9_s11, 16, %s1106_s12, [#allocation2] }
   0x3   :  { %1100 = dma.done.wait [#allocation2], 16 }
   0x4   :  { %1101 = vsyncadd [#allocation2], 4294967280 }
   0x5   :  { %14 = sfence }
   0x6   :  { %15 = vsyncpa [#allocation5], 0 }
   0x7   :  { %16 = vsyncpa [#allocation6], 0  ;;  %s21_s15 = sshll.u32 %s1230_s1, 4  ;;  %s1107_s16 = smov [#allocation4]   ;;  %s22_s15 = int_to_ptr.hbm [resolvable:$true] %s21_s15 }
   0x8   :  { %s23_s17 = sshll.u32 %s1107_s16, 4  ;;  %s1108_s18 = smov 128   ;;  %s24_s17 = int_to_ptr.vmem [resolvable:$true] %s23_s17 }
   0x9   :  { %s1109_s19 = smov 8  }
   0xa   :  { %29 = dma.hbm_to_vmem [thread:$0]  %s22_s15, 2048, %s24_s17, [#allocation5], %s1108_s18, %s1108_s18, %s1109_s19  }
   0xb   :  { %1102 = dma.done.wait [#allocation5], 2048  }
   0xc   :  { %1103 = vsyncadd [#allocation5], 4294965248  ;;  %v503_v0 = vld [vmem:[#allocation4 + $0x40] sm:$0xff]  ;;  %v505_v2 = vld [vmem:[#allocation4 + $0x50] sm:$0xff]  ;;  %s1005_s0 = sld [smem:[#allocation3 + $0x3]]  ;;  %v46_v6 = vlaneseq  ;;  %vm217_vm4 = vcmask 130048  }
   0xd   :  { %v38_v1 = vld [vmem:[#allocation4] sm:$0xff]  ;;  %549 = vxpose.xlu0.b32.start [1/2] (short) (narrow) %v503_v0, 16  ;;  %581 = vxpose.xlu2.b32.start [1/2] (short) (narrow) %v505_v2, 16  ;;  %v504_v3 = vld [vmem:[#allocation4 + $0x48] sm:$0xff]  ;;  %v506_v5 = vld [vmem:[#allocation4 + $0x58] sm:$0xff]  ;;  %v1110_v25 = vmov 0.0  }
   0xe   :  { %89 = vxpose.xlu1.b32.start [1/2] (short) (narrow) %v38_v1, 16  ;;  %v39_v4 = vld [vmem:[#allocation4 + $0x8] sm:$0xff]  ;;  %v1136_v7 = vshrl.u32 %v46_v6, 7  ;;  %v40_v11 = vld [vmem:[#allocation4 + $0x10] sm:$0xff]  ;;  %v507_v12 = vld [vmem:[#allocation4 + $0x60] sm:$0xff]  ;;  %v1143_v18 = vand.u32 127, %v46_v6 }
   0xf   :  { %v42_v13 = vld [vmem:[#allocation4 + $0x20] sm:$0xff]  ;;  %v41_v21 = vld [vmem:[#allocation4 + $0x18] sm:$0xff]  ;;  %v508_v22 = vld [vmem:[#allocation4 + $0x68] sm:$0xff]  ;;  %s975_s1 = sld [smem:[#allocation3 + $0x1]]  ;;  %s1111_s22 = smov [#allocation7]  }
  0x10   :  { %v1139_v9 = vadd.s32 8, %v1136_v7  ;;  %v43_v24 = vld [vmem:[#allocation4 + $0x28] sm:$0xff]  ;;  %v509_v28 = vld [vmem:[#allocation4 + $0x70] sm:$0xff]  ;;  %v510_v30 = vld [vmem:[#allocation4 + $0x78] sm:$0xff]  ;;  %s1004_s20 = sld [smem:[#allocation3 + $0x2]]  ;;  %s960_s23 = sshll.u32 %s1111_s22, 4  ;;  %s961_s23 = int_to_ptr.vmem [resolvable:$true] %s960_s23 }
  0x11   :  { %v44_v29 = vld [vmem:[#allocation4 + $0x30] sm:$0xff]  ;;  %v45_v31 = vld [vmem:[#allocation4 + $0x38] sm:$0xff]  ;;  %s35_s21 = sld [smem:[#allocation3]]  ;;  %s962_s26 = sshll.u32 %s1231_s2, 4  ;;  %s963_s26 = int_to_ptr.hbm [resolvable:$true] %s962_s26 }
  0x12   :  { %v511_v8 = vstv %s1005_s0 }
  0x13   :  { %v512_v10 = vadd.s32 %v511_v8, %v1136_v7  ;;  %v513_v14 = vadd.s32 %v511_v8, %v1139_v9 }
  0x15   :  { %550 = vxpose.xlu0.b32.end [2/2] (short) (narrow) %v504_v3, 16  ;;  %582 = vxpose.xlu2.b32.end [2/2] (short) (narrow) %v506_v5, 16  ;;  %v1006_v15 = vadd.s32 4294967292, %v512_v10  ;;  %v1007_v16 = vadd.s32 4294967292, %v513_v14  ;;  %v51_v32 = vstv %s975_s1 }
  0x16   :  { %90 = vxpose.xlu1.b32.end [2/2] (short) (narrow) %v39_v4, 16  ;;  %v53_v33 = vadd.s32 %v51_v32, %v1139_v9  ;;  %v52_v35 = vadd.s32 %v51_v32, %v1136_v7  ;;  %v530_v3 = vstv %s1004_s20 }
  0x17   :  { %vm516_vm0 = vcmp.gt.s32.totalorder %v1006_v15, 0  ;;  %vm518_vm1 = vcmp.gt.s32.totalorder %v1007_v16, 0  ;;  %v532_v5 = vadd.s32 %v530_v3, %v1139_v9  ;;  %v531_v6 = vadd.s32 %v530_v3, %v1136_v7 }
  0x18   :  { %v517_v17 = vsel %vm516_vm0, %v1006_v15, 0  ;;  %v519_v19 = vsel %vm518_vm1, %v1007_v16, 0  ;;  %v977_v34 = vadd.s32 4294967292, %v53_v33  ;;  %v976_v37 = vadd.s32 4294967292, %v52_v35 }
  0x19   :  { %vm520_vm2 = vcmp.lt.s32.totalorder %v517_v17, 15  ;;  %vm522_vm3 = vcmp.lt.s32.totalorder %v519_v19, 15  ;;  %v1011_v8 = vadd.s32 4294967292, %v532_v5  ;;  %v1010_v10 = vadd.s32 4294967292, %v531_v6 }
  0x1a   :  { %v521_v20 = vsel %vm520_vm2, %v517_v17, 15  ;;  %v523_v23 = vsel %vm522_vm3, %v519_v19, 15  ;;  %vm58_vm7 = vcmp.gt.s32.totalorder %v977_v34, 0  ;;  %vm56_vm10 = vcmp.gt.s32.totalorder %v976_v37, 0 }
  0x1b   :  { %vm525_vm5 = vcmp.eq.s32.totalorder %v1143_v18, %v523_v23  ;;  %vm524_vm6 = vcmp.eq.s32.totalorder %v1143_v18, %v521_v20  ;;  %v59_v36 = vsel %vm58_vm7, %v977_v34, 0  ;;  %v57_v40 = vsel %vm56_vm10, %v976_v37, 0 }
  0x1c   :  { %v1009_v26 = vsel %vm525_vm5, 1.0, %v1110_v25  ;;  %v1008_v27 = vsel %vm524_vm6, 1.0, %v1110_v25  ;;  %vm62_vm8 = vcmp.lt.s32.totalorder %v59_v36, 15  ;;  %vm60_vm11 = vcmp.lt.s32.totalorder %v57_v40, 15 }
  0x1d   :  { %121 = vxpose.xlu0.b32.start [1/2] (short) (narrow) %v40_v11, 16  ;;  %153 = vxpose.xlu2.b32.start [1/2] (short) (narrow) %v42_v13, 16  ;;  %v63_v38 = vsel %vm62_vm8, %v59_v36, 15  ;;  %v61_v41 = vsel %vm60_vm11, %v57_v40, 15  ;;  %vm537_vm13 = vcmp.gt.s32.totalorder %v1011_v8, 0  ;;  %vm535_vm14 = vcmp.gt.s32.totalorder %v1010_v10, 0 }
  0x1e   :  { %613 = vxpose.xlu1.b32.start [1/2] (short) (narrow) %v507_v12, 16  ;;  %1014 = vmatpush.xpose.msk.msra.mxu2 %vm217_vm4, %v1009_v26  ;;  %vm65_vm9 = vcmp.eq.s32.totalorder %v1143_v18, %v63_v38  ;;  %vm64_vm12 = vcmp.eq.s32.totalorder %v1143_v18, %v61_v41  ;;  %v538_v11 = vsel %vm537_vm13, %v1011_v8, 0  ;;  %v536_v12 = vsel %vm535_vm14, %v1010_v10, 0 }
  0x1f   :  { %v979_v39 = vsel %vm65_vm9, 1.0, %v1110_v25  ;;  %v978_v42 = vsel %vm64_vm12, 1.0, %v1110_v25  ;;  %vm541_vm15 = vcmp.lt.s32.totalorder %v538_v11, 15  ;;  %vm539_vm0 = vcmp.lt.s32.totalorder %v536_v12, 15 }
  0x20   :  { %984 = vmatpush.xpose.msk.msra.mxu0 %vm217_vm4, %v979_v39  ;;  %v542_v14 = vsel %vm541_vm15, %v538_v11, 15  ;;  %v540_v15 = vsel %vm539_vm0, %v536_v12, 15  ;;  %v70_v26 = vstv %s35_s21 }
  0x21   :  { %vm544_vm1 = vcmp.eq.s32.totalorder %v1143_v18, %v542_v14  ;;  %vm543_vm2 = vcmp.eq.s32.totalorder %v1143_v18, %v540_v15 }
  0x22   :  { %1015 = vmatpush.xpose.msk.msra.mxu2 %vm217_vm4, %v1008_v27  ;;  %v1013_v17 = vsel %vm544_vm1, 1.0, %v1110_v25  ;;  %v1012_v19 = vsel %vm543_vm2, 1.0, %v1110_v25  ;;  %v72_v27 = vadd.s32 %v70_v26, %v1139_v9 }
  0x23   :  { %1024 = vmatpush.xpose.msk.msra.mxu3 %vm217_vm4, %v1013_v17 }
  0x24   :  { %985 = vmatpush.xpose.msk.msra.mxu0 %vm217_vm4, %v978_v42 }
  0x25   :  { %122 = vxpose.xlu0.b32.end [2/2] (short) (narrow) %v41_v21, 16  ;;  %154 = vxpose.xlu2.b32.end [2/2] (short) (narrow) %v43_v24, 16 }
  0x26   :  { %614 = vxpose.xlu1.b32.end [2/2] (short) (narrow) %v508_v22, 16 }
  0x27   :  { %1025 = vmatpush.xpose.msk.msra.mxu3 %vm217_vm4, %v1012_v19 }
  0x2d   :  { %645 = vxpose.xlu0.b32.start [1/2] (short) (narrow) %v509_v28, 16  ;;  %v71_v28 = vadd.s32 %v70_v26, %v1136_v7 }
  0x2e   :  { %185 = vxpose.xlu1.b32.start [1/2] (short) (narrow) %v44_v29, 16  ;;  %v981_v29 = vadd.s32 4294967292, %v72_v27 }
  0x30   :  { %vm77_vm3 = vcmp.gt.s32.totalorder %v981_v29, 0 }
  0x35   :  { %646 = vxpose.xlu0.b32.end [2/2] (short) (narrow) %v510_v30, 16  ;;  %v980_v30 = vadd.s32 4294967292, %v71_v28 }
  0x36   :  { %186 = vxpose.xlu1.b32.end [2/2] (short) (narrow) %v45_v31, 16  ;;  %v78_v31 = vsel %vm77_vm3, %v981_v29, 0 }
  0x37   :  { %vm75_vm5 = vcmp.gt.s32.totalorder %v980_v30, 0  ;;  %vm81_vm6 = vcmp.lt.s32.totalorder %v78_v31, 15 }
  0x38   :  { %v76_v32 = vsel %vm75_vm5, %v980_v30, 0  ;;  %v82_v33 = vsel %vm81_vm6, %v78_v31, 15 }
  0x39   :  { %vm79_vm7 = vcmp.lt.s32.totalorder %v76_v32, 15  ;;  %vm84_vm8 = vcmp.eq.s32.totalorder %v1143_v18, %v82_v33 }
  0x3a   :  { %v80_v34 = vsel %vm79_vm7, %v76_v32, 15  ;;  %v983_v35 = vsel %vm84_vm8, 1.0, %v1110_v25 }
  0x3b   :  { %vm83_vm9 = vcmp.eq.s32.totalorder %v1143_v18, %v80_v34  ;;  %994 = vmatpush.xpose.msk.msra.mxu1 %vm217_vm4, %v983_v35 }
  0x3c   :  { %v982_v7 = vsel %vm83_vm9, 1.0, %v1110_v25 }
  0x3f   :  { %995 = vmatpush.xpose.msk.msra.mxu1 %vm217_vm4, %v982_v7 }
  0xa6   :  { %v597_v47 = vpop.trf.xlu2 }
  0xae   :  { %v598_v49 = vpop.trf.xlu2 }
  0xb1   :  { %v565_v43 = vpop.trf.xlu0 }
  0xb2   :  { %v105_v44 = vpop.trf.xlu1  ;;  %1016 = vmatmul.msk.f32.vlgmr.msra.gmra.mxu2 %vm217_vm4, %v565_v43 }
  0xb3   :  { %986 = vmatmul.msk.f32.vlgmr.msra.gmra.mxu0 %vm217_vm4, %v105_v44 }
  0xb6   :  { %v169_v52 = vpop.trf.xlu2 }
  0xb9   :  { %v566_v45 = vpop.trf.xlu0 }
  0xba   :  { %v106_v46 = vpop.trf.xlu1  ;;  %1017 = vmatmul.msk.f32.gmra.mxu2 %vm217_vm4, %v566_v45 }
  0xbb   :  { %987 = vmatmul.msk.f32.gmra.mxu0 %vm217_vm4, %v106_v46 }
  0xbe   :  { %v170_v54 = vpop.trf.xlu2 }
  0xc1   :  { %v137_v48 = vpop.trf.xlu0 }
  0xc2   :  { %1018 = vmatmul.msk.f32.gmra.mxu2 %vm217_vm4, %v597_v47  ;;  %v629_v51 = vpop.trf.xlu1 }
  0xc3   :  { %988 = vmatmul.msk.f32.gmra.mxu0 %vm217_vm4, %v137_v48 }
  0xc9   :  { %v138_v50 = vpop.trf.xlu0 }
  0xca   :  { %1019 = vmatmul.msk.f32.gmra.mxu2 %vm217_vm4, %v598_v49  ;;  %v630_v53 = vpop.trf.xlu1 }
  0xcb   :  { %989 = vmatmul.msk.f32.gmra.mxu0 %vm217_vm4, %v138_v50 }
  0xd1   :  { %v661_v55 = vpop.trf.xlu0 }
  0xd2   :  { %1020 = vmatmul.msk.f32.gmra.mxu2 %vm217_vm4, %v629_v51  ;;  %v201_v56 = vpop.trf.xlu1 }
  0xd3   :  { %990 = vmatmul.msk.f32.gmra.mxu0 %vm217_vm4, %v169_v52 }
  0xd9   :  { %v662_v57 = vpop.trf.xlu0 }
  0xda   :  { %1021 = vmatmul.msk.f32.gmra.mxu2 %vm217_vm4, %v630_v53  ;;  %v202_v58 = vpop.trf.xlu1 }
  0xdb   :  { %991 = vmatmul.msk.f32.gmra.mxu0 %vm217_vm4, %v170_v54 }
  0xe2   :  { %1022 = vmatmul.msk.f32.gmra.mxu2 %vm217_vm4, %v661_v55 }
  0xe3   :  { %992 = vmatmul.msk.f32.gmra.mxu0 %vm217_vm4, %v201_v56 }
  0xea   :  { %1023 = vmatmul.msk.f32.gmra.mxu2 %vm217_vm4, %v662_v57 }
  0xeb   :  { %993 = vmatmul.msk.f32.gmra.mxu0 %vm217_vm4, %v202_v58 }
 0x130   :  { %v265_v59 = vpop.f32.mrf.mxu0 }
 0x131   :  { %289 = vxpose.xlu0.b32.start [1/2] (short) (narrow) %v265_v59, 16 }
 0x135   :  { %v724_v60 = vpop.f32.mrf.mxu2 }
 0x136   :  { %748 = vxpose.xlu2.b32.start [1/2] (short) (narrow) %v724_v60, 16 }
 0x138   :  { %v268_v61 = vpop.f32.mrf.mxu0 }
 0x139   :  { %290 = vxpose.xlu0.b32.end [2/2] (short) (narrow) %v268_v61, 16 }
 0x13d   :  { %v727_v62 = vpop.f32.mrf.mxu2 }
 0x13e   :  { %749 = vxpose.xlu2.b32.end [2/2] (short) (narrow) %v727_v62, 16 }
 0x140   :  { %v271_v63 = vpop.f32.mrf.mxu0 }
 0x145   :  { %v730_v0 = vpop.f32.mrf.mxu2 }
 0x146   :  { %780 = vxpose.xlu1.b32.start [1/2] (short) (narrow) %v730_v0, 16  ;;  %321 = vxpose.xlu2.b32.start [1/2] (short) (narrow) %v271_v63, 16 }
 0x148   :  { %v274_v1 = vpop.f32.mrf.mxu0 }
 0x14d   :  { %v733_v2 = vpop.f32.mrf.mxu2 }
 0x14e   :  { %781 = vxpose.xlu1.b32.end [2/2] (short) (narrow) %v733_v2, 16  ;;  %322 = vxpose.xlu2.b32.end [2/2] (short) (narrow) %v274_v1, 16 }
 0x150   :  { %v277_v4 = vpop.f32.mrf.mxu0 }
 0x155   :  { %v736_v13 = vpop.f32.mrf.mxu2 }
 0x156   :  { %812 = vxpose.xlu0.b32.start [1/2] (short) (narrow) %v736_v13, 16  ;;  %353 = vxpose.xlu1.b32.start [1/2] (short) (narrow) %v277_v4, 16 }
 0x158   :  { %v280_v16 = vpop.f32.mrf.mxu0 }
 0x15d   :  { %v739_v20 = vpop.f32.mrf.mxu2 }
 0x15e   :  { %813 = vxpose.xlu0.b32.end [2/2] (short) (narrow) %v739_v20, 16  ;;  %354 = vxpose.xlu1.b32.end [2/2] (short) (narrow) %v280_v16, 16 }
 0x160   :  { %v283_v21 = vpop.f32.mrf.mxu0 }
 0x165   :  { %v742_v22 = vpop.f32.mrf.mxu2 }
 0x166   :  { %385 = vxpose.xlu0.b32.start [1/2] (short) (narrow) %v283_v21, 16  ;;  %844 = vxpose.xlu2.b32.start [1/2] (short) (narrow) %v742_v22, 16 }
 0x168   :  { %v286_v23 = vpop.f32.mrf.mxu0 }
 0x16d   :  { %v745_v24 = vpop.f32.mrf.mxu2 }
 0x16e   :  { %386 = vxpose.xlu0.b32.end [2/2] (short) (narrow) %v286_v23, 16  ;;  %845 = vxpose.xlu2.b32.end [2/2] (short) (narrow) %v745_v24, 16 }
 0x1cf   :  { %v764_v9 = vpop.trf.xlu2 }
 0x1d0   :  { %1026 = vmatmul.msk.f32.vlgmr.msra.gmra.mxu3 %vm217_vm4, %v764_v9 }
 0x1d5   :  { %v305_v36 = vpop.trf.xlu0 }
 0x1d6   :  { %996 = vmatmul.msk.f32.vlgmr.msra.gmra.mxu1 %vm217_vm4, %v305_v36 }
 0x1d7   :  { %v765_v37 = vpop.trf.xlu2 }
 0x1d8   :  { %1027 = vmatmul.msk.f32.gmra.mxu3 %vm217_vm4, %v765_v37 }
 0x1dd   :  { %v306_v38 = vpop.trf.xlu0 }
 0x1de   :  { %997 = vmatmul.msk.f32.gmra.mxu1 %vm217_vm4, %v306_v38 }
 0x1df   :  { %v337_v18 = vpop.trf.xlu2 }
 0x1e6   :  { %998 = vmatmul.msk.f32.gmra.mxu1 %vm217_vm4, %v337_v18 }
 0x1e7   :  { %v338_v40 = vpop.trf.xlu2 }
 0x1ea   :  { %v796_v39 = vpop.trf.xlu1 }
 0x1eb   :  { %1028 = vmatmul.msk.f32.gmra.mxu3 %vm217_vm4, %v796_v39 }
 0x1ee   :  { %999 = vmatmul.msk.f32.gmra.mxu1 %vm217_vm4, %v338_v40 }
 0x1f2   :  { %v797_v25 = vpop.trf.xlu1 }
 0x1f3   :  { %1029 = vmatmul.msk.f32.gmra.mxu3 %vm217_vm4, %v797_v25 }
 0x1fa   :  { %v828_v41 = vpop.trf.xlu0  ;;  %v369_v42 = vpop.trf.xlu1 }
 0x1fb   :  { %1030 = vmatmul.msk.f32.gmra.mxu3 %vm217_vm4, %v828_v41  ;;  %1000 = vmatmul.msk.f32.gmra.mxu1 %vm217_vm4, %v369_v42 }
 0x1ff   :  { %v860_v45 = vpop.trf.xlu2 }
 0x202   :  { %v829_v43 = vpop.trf.xlu0  ;;  %v370_v44 = vpop.trf.xlu1 }
 0x203   :  { %1031 = vmatmul.msk.f32.gmra.mxu3 %vm217_vm4, %v829_v43  ;;  %1001 = vmatmul.msk.f32.gmra.mxu1 %vm217_vm4, %v370_v44 }
 0x207   :  { %v861_v47 = vpop.trf.xlu2 }
 0x20a   :  { %v401_v46 = vpop.trf.xlu0 }
 0x20b   :  { %1032 = vmatmul.msk.f32.gmra.mxu3 %vm217_vm4, %v860_v45  ;;  %1002 = vmatmul.msk.f32.gmra.mxu1 %vm217_vm4, %v401_v46 }
 0x212   :  { %v402_v48 = vpop.trf.xlu0 }
 0x213   :  { %1033 = vmatmul.msk.f32.gmra.mxu3 %vm217_vm4, %v861_v47  ;;  %1003 = vmatmul.msk.f32.gmra.mxu1 %vm217_vm4, %v402_v48 }
 0x253   :  { %v464_v49 = vpop.f32.mrf.mxu1  ;;  %v923_v50 = vpop.f32.mrf.mxu3 }
 0x254   :  { %488 = vst.msk [vmem:[#allocation7] sm:$0xff] %vm217_vm4, %v464_v49 }
 0x255   :  { %948 = vst.msk [vmem:[#allocation7 + $0x40] sm:$0xff] %vm217_vm4, %v923_v50 }
 0x25b   :  { %v467_v51 = vpop.f32.mrf.mxu1  ;;  %v926_v52 = vpop.f32.mrf.mxu3 }
 0x25c   :  { %489 = vst.msk [vmem:[#allocation7 + $0x8] sm:$0xff] %vm217_vm4, %v467_v51 }
 0x25d   :  { %949 = vst.msk [vmem:[#allocation7 + $0x48] sm:$0xff] %vm217_vm4, %v926_v52 }
 0x263   :  { %v470_v53 = vpop.f32.mrf.mxu1 }
 0x264   :  { %490 = vst.msk [vmem:[#allocation7 + $0x10] sm:$0xff] %vm217_vm4, %v470_v53 }
 0x26b   :  { %v473_v54 = vpop.f32.mrf.mxu1 }
 0x26c   :  { %491 = vst.msk [vmem:[#allocation7 + $0x18] sm:$0xff] %vm217_vm4, %v473_v54 }
 0x26e   :  { %v929_v55 = vpop.f32.mrf.mxu3 }
 0x26f   :  { %950 = vst.msk [vmem:[#allocation7 + $0x50] sm:$0xff] %vm217_vm4, %v929_v55 }
 0x276   :  { %v932_v56 = vpop.f32.mrf.mxu3 }
 0x277   :  { %951 = vst.msk [vmem:[#allocation7 + $0x58] sm:$0xff] %vm217_vm4, %v932_v56 }
 0x278   :  { %v476_v57 = vpop.f32.mrf.mxu1 }
 0x279   :  { %492 = vst.msk [vmem:[#allocation7 + $0x20] sm:$0xff] %vm217_vm4, %v476_v57 }
 0x27e   :  { %v935_v58 = vpop.f32.mrf.mxu3 }
 0x27f   :  { %952 = vst.msk [vmem:[#allocation7 + $0x60] sm:$0xff] %vm217_vm4, %v935_v58 }
 0x280   :  { %v479_v59 = vpop.f32.mrf.mxu1 }
 0x281   :  { %493 = vst.msk [vmem:[#allocation7 + $0x28] sm:$0xff] %vm217_vm4, %v479_v59 }
 0x286   :  { %v938_v60 = vpop.f32.mrf.mxu3 }
 0x287   :  { %953 = vst.msk [vmem:[#allocation7 + $0x68] sm:$0xff] %vm217_vm4, %v938_v60 }
 0x288   :  { %v482_v61 = vpop.f32.mrf.mxu1 }
 0x289   :  { %494 = vst.msk [vmem:[#allocation7 + $0x30] sm:$0xff] %vm217_vm4, %v482_v61 }
 0x28e   :  { %v941_v62 = vpop.f32.mrf.mxu3 }
 0x28f   :  { %954 = vst.msk [vmem:[#allocation7 + $0x70] sm:$0xff] %vm217_vm4, %v941_v62 }
 0x290   :  { %v485_v63 = vpop.f32.mrf.mxu1 }
 0x291   :  { %495 = vst.msk [vmem:[#allocation7 + $0x38] sm:$0xff] %vm217_vm4, %v485_v63 }
 0x296   :  { %v944_v0 = vpop.f32.mrf.mxu3 }
 0x297   :  { %955 = vst.msk [vmem:[#allocation7 + $0x78] sm:$0xff] %vm217_vm4, %v944_v0 }
 0x298   :  { %968 = dma.vmem_to_hbm [thread:$0]  %s961_s23, 2048, %s963_s26, [#allocation6], %s1108_s18, %s1108_s18, %s1109_s19  }
 0x299   :  { %1104 = dma.done.wait [#allocation6], 2048  }
 0x29a   :  { %1105 = vsyncadd [#allocation6], 4294965248 }
 0x29b   :  { %973 = vsyncpa [#allocation5], 1 }
 0x29c   :  { %974 = vsyncpa [#allocation6], 1 }

</bundles_post_ra>
